<compile_context>
chip_gen: v6e
topology: v6e:2x2x1
jax: 0.10.0
libtpu: 0.0.40
codegen_flags: <defaults>
</compile_context>

<pallas_src>
import jax
import jax.numpy as jnp
from jax.experimental import pallas as pl
from jax.experimental.pallas import tpu as pltpu

IN_FEATURES = 80


def mlp_kernel(x_ref, w1_ref, b1_ref, w2_ref, b2_ref, o_ref):
    # fc1 on the MXU: (TILE_B, 80) @ (80, H) -> (TILE_B, H), f32 accumulate.
    h = jnp.dot(x_ref[...], w1_ref[...], preferred_element_type=jnp.float32)
    # bias + ReLU on the VPU ((1, H) broadcasts against (TILE_B, H)).
    h = jnp.maximum(h + b1_ref[...], 0.0)
    # fc2: (TILE_B, H) * (1, H) row, then lane reduce -> (TILE_B, 1).
    # For H <= 128 this is a single-vreg XLU reduce per row group; no MXU N=1
    # matmul, no transpose, no extra (H, TILE_B) VMEM materialization.
    out = jnp.sum(h * w2_ref[...], axis=-1, keepdims=True)
    # b2 is a single scalar read from SMEM (no VMEM tile / vreg broadcast DMA).
    o_ref[...] = (out + b2_ref[0]).astype(o_ref.dtype)


def _round_up(n, m):
    return ((n + m - 1) // m) * m


def _auto_tile_b(batch):
    """Pick a batch-tile size.

    Target: each x tile carries enough HBM traffic (>= ~1 MB) to dwarf the
    ~0.35 us fixed per-grid-step overhead, capped at 4096 rows (raise toward
    8192 on v7x's 3.2 TB/s HBM if desired), while keeping >= 2 grid steps so
    dimension_semantics=("parallel",) can shard across v7x's 2 TensorCores.
    """
    half = pl.cdiv(batch, 2)            # never collapse the grid to 1 step
    t = min(4096, max(8, half))
    return _round_up(t, 8)              # sublane alignment for the x / out blocks


def net_forward(x, w1, b1, w2, b2, *, tile_b=None):
    """Pallas equivalent of Net.forward: fc2(relu(fc1(x))).

    The batch dimension is tiled with a 1-D grid so BlockSpec double-buffers
    the x DMA against compute (VMEM use is constant in batch).  Weights stay
    resident in VMEM (index_map always returns block (0, 0)); b2 rides in SMEM.
    Ragged batches are handled by Pallas' partial last block (no jnp.pad pass
    over x).  x / w1 may be bf16 (accumulation stays f32).
    """
    batch, in_features = x.shape
    hidden = w1.shape[1]
    assert in_features == IN_FEATURES

    if tile_b is None:
        tile_b = _auto_tile_b(batch)
    tile_b = min(tile_b, _round_up(batch, 8))
    num_tiles = pl.cdiv(batch, tile_b)

    w2_row = w2.reshape(1, hidden)   # (hidden, 1) column -> (1, hidden) row
    b2_smem = b2.reshape(1).astype(jnp.float32)   # scalar bias for SMEM

    # Explicit VMEM budget (v7x-aware: 64 MiB physical / 32 MiB default scope):
    # double-buffered x tile (lanes padded to 128), double-buffered output tile
    # ((tile_b, 1) lane-pads to 128), resident weight tiles sized from the real
    # `hidden`, plus the fc1 activation intermediate and regalloc headroom.
    lane = 128
    h_lanes = _round_up(hidden, lane)
    in_lanes = _round_up(IN_FEATURES, lane)
    x_buf = tile_b * in_lanes * x.dtype.itemsize
    out_buf = tile_b * lane * 4
    w1_buf = _round_up(IN_FEATURES, 8) * h_lanes * w1.dtype.itemsize
    bias_bufs = 2 * 8 * h_lanes * 4                      # b1 row + w2 row
    h_buf = tile_b * h_lanes * 4                          # fc1 activation (f32)
    vmem_limit = 2 * (x_buf + out_buf + w1_buf + bias_bufs) + 2 * h_buf + (8 << 20)

    out = pl.pallas_call(
        mlp_kernel,
        out_shape=jax.ShapeDtypeStruct((batch, 1), jnp.float32),
        grid=(num_tiles,),
        in_specs=[
            # x: streamed per batch tile (the only large HBM stream).
            # If a trace still shows exposed DMA at step boundaries, add
            # pipeline_mode=pl.Buffered(3) here.
            pl.BlockSpec((tile_b, IN_FEATURES), lambda i: (i, 0)),
            pl.BlockSpec((IN_FEATURES, hidden), lambda i: (0, 0)),   # w1: resident
            pl.BlockSpec((1, hidden), lambda i: (0, 0)),             # b1: resident
            pl.BlockSpec((1, hidden), lambda i: (0, 0)),             # w2 row: resident
            pl.BlockSpec(memory_space=pltpu.MemorySpace.SMEM),       # b2: scalar in SMEM
        ],
        out_specs=pl.BlockSpec((tile_b, 1), lambda i: (i, 0)),
        compiler_params=pltpu.CompilerParams(
            # Batch tiles are independent -> megacore-parallel on v7x (2 TCs),
            # no-op on v5e/v6e.
            dimension_semantics=("parallel",),
            vmem_limit_bytes=int(vmem_limit),
        ),
    )(x, w1, b1, w2_row, b2_smem)

    return out


def init_params(key, hidden, dtype=jnp.float32):
    """Deterministic param init mirroring nn.Linear shapes.

    PyTorch: fc1.weight (hidden, 80), fc1.bias (hidden,),
             fc2.weight (1, hidden),  fc2.bias (1,).
    We store weights transposed (in, out) for the x @ W layout.
    """
    k1, k2, k3, k4 = jax.random.split(key, 4)
    bound1 = 1.0 / jnp.sqrt(IN_FEATURES)
    w1 = jax.random.uniform(k1, (IN_FEATURES, hidden), jnp.float32, -bound1, bound1)
    b1 = jax.random.uniform(k2, (1, hidden), jnp.float32, -bound1, bound1)
    bound2 = 1.0 / jnp.sqrt(hidden)
    w2 = jax.random.uniform(k3, (hidden, 1), jnp.float32, -bound2, bound2)
    b2 = jax.random.uniform(k4, (1, 1), jnp.float32, -bound2, bound2)
    return w1.astype(dtype), b1.astype(dtype), w2.astype(dtype), b2


if __name__ == "__main__":
    hidden = 32
    batch = 200          # not a multiple of the tile -> exercises the ragged last block

    key = jax.random.PRNGKey(0)
    kx, kp = jax.random.split(key)
    x = jax.random.normal(kx, (batch, IN_FEATURES), dtype=jnp.float32)
    w1, b1, w2, b2 = init_params(kp, hidden)

    # Auto tile picker keeps >= 2 grid steps (here: 2 tiles of 104 rows, last ragged).
    out = net_forward(x, w1, b1, w2, b2)
    out = jax.block_until_ready(out)

    # Pure-JAX reference check
    ref = jnp.maximum(x @ w1 + b1, 0.0) @ w2 + b2
    assert out.shape == (batch, 1)
    assert jnp.allclose(out, ref, atol=1e-5), "mismatch vs reference"

    print("KERNEL_OK")
</pallas_src>

<mosaic_0001>
module attributes {stable_mosaic.version = 11 : i64} {
  func.func @mlp_kernel(%arg0: i32, %arg1: memref<104x80xf32, #tpu.memory_space<vmem>>, %arg2: memref<80x32xf32, #tpu.memory_space<vmem>>, %arg3: memref<1x32xf32, #tpu.memory_space<vmem>>, %arg4: memref<1x32xf32, #tpu.memory_space<vmem>>, %arg5: memref<1xf32, #tpu.memory_space<smem>>, %arg6: memref<104x1xf32, #tpu.memory_space<vmem>>) attributes {dimension_semantics = [#tpu.dimension_semantics<parallel>], iteration_bounds = array<i64: 2>, scalar_prefetch = 0 : i64, scratch_operands = 0 : i64, tpu.core_type = #tpu.core_type<tc>, window_params = [{transform_indices = @transform_0, window_bounds = array<i64: 104, 80>}, {pipeline_mode = #tpu.pipeline_mode<synchronous>, transform_indices = @transform_1, window_bounds = array<i64: 80, 32>}, {pipeline_mode = #tpu.pipeline_mode<synchronous>, transform_indices = @transform_2, window_bounds = array<i64: 1, 32>}, {pipeline_mode = #tpu.pipeline_mode<synchronous>, transform_indices = @transform_3, window_bounds = array<i64: 1, 32>}, {transform_indices = @transform_4, window_bounds = array<i64: 1>}, {transform_indices = @transform_5, window_bounds = array<i64: 104, 1>}]} {
    %c0 = arith.constant 0 : index
    %c0_0 = arith.constant 0 : index
    %0 = vector.load %arg1[%c0, %c0_0] : memref<104x80xf32, #tpu.memory_space<vmem>>, vector<104x80xf32>
    %c0_1 = arith.constant 0 : index
    %c0_2 = arith.constant 0 : index
    %1 = vector.load %arg2[%c0_1, %c0_2] : memref<80x32xf32, #tpu.memory_space<vmem>>, vector<80x32xf32>
    %cst = arith.constant dense<0.000000e+00> : vector<104x32xf32>
    %2 = tpu.matmul %0, %1, %cst {dimension_numbers = #tpu.dot_dimension_numbers<[1], [0], [0], [1], [0, 0, 1, 1], [], []>} : vector<104x80xf32>, vector<80x32xf32>, vector<104x32xf32> -> vector<104x32xf32>
    %c0_3 = arith.constant 0 : index
    %c0_4 = arith.constant 0 : index
    %3 = vector.load %arg3[%c0_3, %c0_4] : memref<1x32xf32, #tpu.memory_space<vmem>>, vector<1x32xf32>
    %4 = vector.broadcast %3 : vector<1x32xf32> to vector<104x32xf32>
    %5 = arith.addf %2, %4 : vector<104x32xf32>
    %cst_5 = arith.constant 0.000000e+00 : f32
    %6 = vector.broadcast %cst_5 : f32 to vector<104x32xf32>
    %7 = arith.maximumf %5, %6 : vector<104x32xf32>
    %c0_6 = arith.constant 0 : index
    %c0_7 = arith.constant 0 : index
    %8 = vector.load %arg4[%c0_6, %c0_7] : memref<1x32xf32, #tpu.memory_space<vmem>>, vector<1x32xf32>
    %9 = vector.broadcast %8 : vector<1x32xf32> to vector<104x32xf32>
    %10 = arith.mulf %7, %9 : vector<104x32xf32>
    %cst_8 = arith.constant dense<0.000000e+00> : vector<104xf32>
    %11 = vector.multi_reduction <add>, %10, %cst_8 [1] : vector<104x32xf32> to vector<104xf32>
    %12 = vector.shape_cast %11 : vector<104xf32> to vector<104x1xf32>
    %c0_9 = arith.constant 0 : index
    %13 = memref.load %arg5[%c0_9] : memref<1xf32, #tpu.memory_space<smem>>
    %14 = vector.broadcast %13 : f32 to vector<104x1xf32>
    %15 = arith.addf %12, %14 : vector<104x1xf32>
    %c0_10 = arith.constant 0 : index
    %c0_11 = arith.constant 0 : index
    %16 = vector.load %arg6[%c0_10, %c0_11] : memref<104x1xf32, #tpu.memory_space<vmem>>, vector<104x1xf32>
    tpu.vector_store %arg6[%c0_10, %c0_11], %15 {strides = array<i32>} : memref<104x1xf32, #tpu.memory_space<vmem>>, vector<104x1xf32>,
    return
  }
  func.func @transform_0(%arg0: i32) -> (i32, i32) {
    %c0_i32 = arith.constant 0 : i32
    %c0_i32_0 = arith.constant 0 : i32
    return %arg0, %c0_i32 : i32, i32
  }
  func.func @transform_1(%arg0: i32) -> (i32, i32) {
    %c0_i32 = arith.constant 0 : i32
    %c0_i32_0 = arith.constant 0 : i32
    %c0_i32_1 = arith.constant 0 : i32
    return %c0_i32, %c0_i32_0 : i32, i32
  }
  func.func @transform_2(%arg0: i32) -> (i32, i32) {
    %c0_i32 = arith.constant 0 : i32
    %c0_i32_0 = arith.constant 0 : i32
    %c0_i32_1 = arith.constant 0 : i32
    return %c0_i32, %c0_i32_0 : i32, i32
  }
  func.func @transform_3(%arg0: i32) -> (i32, i32) {
    %c0_i32 = arith.constant 0 : i32
    %c0_i32_0 = arith.constant 0 : i32
    %c0_i32_1 = arith.constant 0 : i32
    return %c0_i32, %c0_i32_0 : i32, i32
  }
  func.func @transform_4(%arg0: i32) -> i32 {
    %c0_i32 = arith.constant 0 : i32
    %c0_i32_0 = arith.constant 0 : i32
    return %c0_i32 : i32
  }
  func.func @transform_5(%arg0: i32) -> (i32, i32) {
    %c0_i32 = arith.constant 0 : i32
    %c0_i32_0 = arith.constant 0 : i32
    return %arg0, %c0_i32 : i32, i32
  }
}

</mosaic_0001>

<bundles_post_ra>
// kernel: tpu_custom_call.1
= control target key start
LH: loop header
LB: loop body
LE: loop exit
PB: predicated region body
PF: predicated region fallthrough
CT: control target
= control target key end

     0   :  { %s1477_s0 = inlined_call_operand.vmem [shape: f32[200,80], index: 0, kind: input, shape index: {}]   ;;  %s1478_s1 = inlined_call_operand.vmem [shape: f32[80,32], index: 1, kind: input, shape index: {}]   ;;  %s1479_s2 = inlined_call_operand.vmem [shape: f32[1,32], index: 2, kind: input, shape index: {}]   ;;  %s1480_s3 = inlined_call_operand.vmem [shape: f32[1,32], index: 3, kind: input, shape index: {}]   ;;  %s1481_s4 = inlined_call_operand.<no memory space> [shape: f32[1], index: 4, kind: input, shape index: {}]   ;;  %s1482_s5 = inlined_call_operand.vmem [shape: f32[200,1], index: 5, kind: output, shape index: {}]  }
   0x1   :  { %10 = sst [smem:[#allocation2]] %s1481_s4 }
   0x2   :  { %s1169_s20 = smov 0   ;;  %s1171_s21 = smov 0  }
   0x3   :  { %s1173_s22 = smov 0  }
   0x4 LB: > { %s1182_s4 = sadd.s32 4294967295, %s1100_s22   ;;  %s1184_s23 = sadd.s32 1, %s1100_s22   ;;  %s1100_s22 = sphi %s1173_s22, %s1489_s22   ;;  %s1096_s21 = sphi %s1171_s21, %s1488_s21   ;;  %s1092_s20 = sphi %s1169_s20, %s1487_s20  }
   0x5   : > { %s130_s24 = ssub.s32 %s1100_s22, %s1184_s23  ;;  %s133_s25 = sadd.s32 1, %s1096_s21 }
   0x6   : > { %p131_p0 = scmp.eq.s32.totalorder %s130_s24, 0  ;;  %p143_p1 = scmp.ne.s32.totalorder %s1096_s21, %s1092_s20 }
   0x7   : > { %p144_p2 = scmp.eq.s32.totalorder %s1182_s4, 1  ;;  %p818_p3 = scmp.ge.s32.totalorder %s1100_s22, 1 }
   0x8   : > { %s1192_s26 = scalar_select %p131_p0, %s1096_s21, %s133_s25  }
   0x9   : > { %p1194_p4 = por %p144_p2, %p143_p1  ;;  %p197_p5 = scmp.lt.s32.totalorder %s1100_s22, 3 }
   0xb   : > { %p198_p6 = pnand %p818_p3, %p197_p5 }
   0xc   : > { %s1207_s7 = smul.u32 (!%p198_p6), 13, %s1182_s4  ;;  %s520_s14 = sld [smem:[#allocation2]] (!%p198_p6) }
   0xd   : > { %201 = sbr.rel (%p198_p6) target bundleno = 462 (0x1ce), region = 40  ;;  %s225_s15 = sand.u32 (!%p198_p6), 1, %s1092_s20  }
   0xe   : > { %p233_p7 = scmp.lt.s32.totalorder (!%p198_p6), %s1207_s7, 24 }
  0x12   : > { %v269_v0 = vld [vmem:[%s1478_s1 + $0x48] sm:$0xff]  ;;  %v1134_v1 = vmov 0.0   ;;  %v268_v2 = vld [vmem:[%s1478_s1 + $0x40] sm:$0xff]  ;;  %v267_v3 = vld [vmem:[%s1478_s1 + $0x38] sm:$0xff]  ;;  %s234_s16 = scalar_select %p233_p7, %s1207_s7, 24  ;;  %vm277_vm0 = vcmask 654336  }
  0x13   : > { %871 = vmatprep.subr.mxu0 %v1134_v1  ;;  %930 = vmatprep.subr.mxu1 %v1134_v1  ;;  %v266_v4 = vld [vmem:[%s1478_s1 + $0x30] sm:$0xff]  ;;  %v265_v5 = vld [vmem:[%s1478_s1 + $0x28] sm:$0xff]  ;;  %v264_v6 = vld [vmem:[%s1478_s1 + $0x20] sm:$0xff]  ;;  %vm1135_vm1 = vmmov 0   ;;  %vm480_vm2 = vcmask 261120   ;;  %vm535_vm3 = vcmask 7168  }
  0x14   : > { %872 = vmatpush3.msra.mxu0 %v269_v0  ;;  %940 = vmatpush3.msra.mxu1 %v269_v0  ;;  %v263_v7 = vld [vmem:[%s1478_s1 + $0x18] sm:$0xff]  ;;  %v262_v8 = vld [vmem:[%s1478_s1 + $0x10] sm:$0xff]  ;;  %s819_s24 = sshll.u32 %s234_s16, 3  ;;  %v261_v9 = vld [vmem:[%s1478_s1 + $0x8] sm:$0xff]  ;;  %s950_s16 = smul.u32 104, %s225_s15 }
  0x15   : > { %873 = vmatprep.subr.mxu0 %v1134_v1  ;;  %931 = vmatprep.subr.mxu1 %v1134_v1  ;;  %s1249_s6 = scalar_lea.vmem %s1477_s0, %s819_s24  ;;  %v260_v10 = vld [vmem:[%s1478_s1] sm:$0xff]  ;;  %s557_s20 = ssub.s32 (%p1194_p4), 25, %s1207_s7 }
  0x16   : > { %874 = vmatpush3.msra.mxu0 %v268_v2  ;;  %941 = vmatpush3.msra.mxu1 %v268_v2  ;;  %v247_v11 = vld [vmem:[%s1249_s6] sm:$0xff]  ;;  %v254_v12 = vld [vmem:[%s1249_s6 + $0x38] sm:$0xff]  ;;  %v248_v13 = vld [vmem:[%s1249_s6 + $0x8] sm:$0xff]  ;;  %s1360_s17 = scalar_lea.vmem [#allocation3], %s950_s16   ;;  %s847_s18 = smul.u32 (%p1194_p4), 104, %s1182_s4 }
  0x17   : > { %875 = vmatprep.subr.mxu0 %v1134_v1  ;;  %932 = vmatprep.subr.mxu1 %v1134_v1  ;;  %v255_v14 = vld [vmem:[%s1249_s6 + $0x40] sm:$0xff]  ;;  %v249_v15 = vld [vmem:[%s1249_s6 + $0x10] sm:$0xff]  ;;  %v256_v16 = vld [vmem:[%s1249_s6 + $0x48] sm:$0xff]  ;;  %p558_p8 = scmp.lt.s32.totalorder (%p1194_p4), %s557_s20, 13 }
  0x18   : > { %876 = vmatpush3.msra.mxu0 %v267_v3  ;;  %942 = vmatpush3.msra.mxu1 %v267_v3  ;;  %v250_v17 = vld [vmem:[%s1249_s6 + $0x18] sm:$0xff]  ;;  %v257_v18 = vld [vmem:[%s1249_s6 + $0x50] sm:$0xff]  ;;  %v251_v19 = vld [vmem:[%s1249_s6 + $0x20] sm:$0xff]  ;;  %s1395_s24 = scalar_lea.vmem (%p1194_p4), %s1482_s5, %s847_s18  }
  0x19   : > { %877 = vmatprep.subr.mxu0 %v1134_v1  ;;  %933 = vmatprep.subr.mxu1 %v1134_v1  ;;  %v258_v20 = vld [vmem:[%s1249_s6 + $0x58] sm:$0xff]  ;;  %v252_v21 = vld [vmem:[%s1249_s6 + $0x28] sm:$0xff]  ;;  %v259_v22 = vld [vmem:[%s1249_s6 + $0x60] sm:$0xff] }
  0x1a   : > { %878 = vmatpush3.msra.mxu0 %v266_v4  ;;  %943 = vmatpush3.msra.mxu1 %v266_v4  ;;  %v253_v23 = vld [vmem:[%s1249_s6 + $0x30] sm:$0xff]  ;;  %v1313_v24 = vld [vmem:[%s1479_s2] ss:$0 sm:$0xff] }
  0x1b   : > { %879 = vmatprep.subr.mxu0 %v1134_v1  ;;  %934 = vmatprep.subr.mxu1 %v1134_v1  ;;  %v1320_v31 = vld [vmem:[%s1480_s3] ss:$0 sm:$0xff] }
  0x1c   : > { %880 = vmatpush3.msra.mxu0 %v265_v5  ;;  %944 = vmatpush3.msra.mxu1 %v265_v5 }
  0x1d   : > { %881 = vmatprep.subr.mxu0 %v1134_v1  ;;  %935 = vmatprep.subr.mxu1 %v1134_v1 }
  0x1e   : > { %882 = vmatpush3.msra.mxu0 %v264_v6  ;;  %945 = vmatpush3.msra.mxu1 %v264_v6 }
  0x1f   : > { %883 = vmatprep.subr.mxu0 %v1134_v1  ;;  %936 = vmatprep.subr.mxu1 %v1134_v1 }
  0x20   : > { %884 = vmatpush3.msra.mxu0 %v263_v7  ;;  %946 = vmatpush3.msra.mxu1 %v263_v7 }
  0x21   : > { %885 = vmatprep.subr.mxu0 %v1134_v1  ;;  %937 = vmatprep.subr.mxu1 %v1134_v1 }
  0x22   : > { %886 = vmatpush3.msra.mxu0 %v262_v8  ;;  %947 = vmatpush3.msra.mxu1 %v262_v8 }
  0x23   : > { %887 = vmatprep.subr.mxu0 %v1134_v1  ;;  %938 = vmatprep.subr.mxu1 %v1134_v1 }
  0x24   : > { %888 = vmatpush3.msra.mxu0 %v261_v9  ;;  %948 = vmatpush3.msra.mxu1 %v261_v9 }
  0x25   : > { %889 = vmatprep.subr.mxu0 %v1134_v1  ;;  %939 = vmatprep.subr.mxu1 %v1134_v1 }
  0x26   : > { %890 = vmatpush3.msra.mxu0 %v260_v10  ;;  %949 = vmatpush3.msra.mxu1 %v260_v10 }
  0x27   : > { %891 = vmatprep.mubr.msk.f32.mxu0 %vm1135_vm1, %v1134_v1  ;;  %912 = vmatprep.mubr.msk.f32.mxu1 %vm1135_vm1, %v1134_v1 }
  0x28   : > { %892 = vmatmul.mubr.msk.f32.vlgmr.msra.gmra.mxu0 %vm277_vm0, %v247_v11  ;;  %913 = vmatmul.mubr.msk.f32.vlgmr.msra.gmra.mxu1 %vm277_vm0, %v254_v12 }
  0x29   : > { %894 = vmatprep.mubr.msk.f32.mxu0 %vm1135_vm1, %v1134_v1  ;;  %915 = vmatprep.mubr.msk.f32.mxu1 %vm1135_vm1, %v1134_v1 }
  0x2c   : > { %895 = vmatmul.mubr.msk.f32.gmra.mxu0 %vm277_vm0, %v248_v13  ;;  %916 = vmatmul.mubr.msk.f32.gmra.mxu1 %vm277_vm0, %v255_v14 }
  0x2d   : > { %897 = vmatprep.mubr.msk.f32.mxu0 %vm1135_vm1, %v1134_v1  ;;  %918 = vmatprep.mubr.msk.f32.mxu1 %vm1135_vm1, %v1134_v1 }
  0x30   : > { %898 = vmatmul.mubr.msk.f32.gmra.mxu0 %vm277_vm0, %v249_v15  ;;  %919 = vmatmul.mubr.msk.f32.gmra.mxu1 %vm277_vm0, %v256_v16 }
  0x31   : > { %900 = vmatprep.mubr.msk.f32.mxu0 %vm1135_vm1, %v1134_v1  ;;  %921 = vmatprep.mubr.msk.f32.mxu1 %vm1135_vm1, %v1134_v1 }
  0x34   : > { %901 = vmatmul.mubr.msk.f32.gmra.mxu0 %vm277_vm0, %v250_v17  ;;  %922 = vmatmul.mubr.msk.f32.gmra.mxu1 %vm277_vm0, %v257_v18 }
  0x35   : > { %903 = vmatprep.mubr.msk.f32.mxu0 %vm1135_vm1, %v1134_v1  ;;  %924 = vmatprep.mubr.msk.f32.mxu1 %vm1135_vm1, %v1134_v1 }
  0x38   : > { %904 = vmatmul.mubr.msk.f32.gmra.mxu0 %vm277_vm0, %v251_v19  ;;  %925 = vmatmul.mubr.msk.f32.gmra.mxu1 %vm277_vm0, %v258_v20 }
  0x39   : > { %906 = vmatprep.mubr.msk.f32.mxu0 %vm1135_vm1, %v1134_v1  ;;  %927 = vmatprep.mubr.msk.f32.mxu1 %vm1135_vm1, %v1134_v1 }
  0x3c   : > { %907 = vmatmul.mubr.msk.f32.gmra.mxu0 %vm277_vm0, %v252_v21  ;;  %928 = vmatmul.mubr.msk.f32.gmra.mxu1 %vm277_vm0, %v259_v22 }
  0x3d   : > { %909 = vmatprep.mubr.msk.f32.mxu0 %vm1135_vm1, %v1134_v1 }
  0x40   : > { %910 = vmatmul.mubr.msk.f32.gmra.mxu0 %vm277_vm0, %v253_v23 }
  0xe8   : > { %v383_v25 = vpop.f32.mrf.mxu0  ;;  %v418_v26 = vpop.f32.mrf.mxu1 }
  0xe9   : > { %v384_v27 = vadd.f32 %v1313_v24, %v383_v25  ;;  %v419_v28 = vadd.f32 %v1313_v24, %v418_v26 }
  0xea   : > { %v893_v29 = vpop.f32.mrf.mxu0  ;;  %v914_v30 = vpop.f32.mrf.mxu1 }
  0xeb   : > { %v447_v32 = vmax.f32 %v384_v27, 0.0  ;;  %v454_v33 = vmax.f32 %v419_v28, 0.0 }
  0xec   : > { %v388_v34 = vpop.f32.mrf.mxu0  ;;  %v423_v35 = vpop.f32.mrf.mxu1 }
  0xed   : > { %v389_v36 = vadd.f32 %v1313_v24, %v388_v34  ;;  %v424_v37 = vadd.f32 %v1313_v24, %v423_v35  ;;  %v467_v38 = vmul.f32 %v1320_v31, %v447_v32  ;;  %v474_v39 = vmul.f32 %v1320_v31, %v454_v33 }
  0xee   : > { %v896_v40 = vpop.f32.mrf.mxu0  ;;  %v917_v41 = vpop.f32.mrf.mxu1 }
  0xef   : > { %v448_v42 = vmax.f32 %v389_v36, 0.0  ;;  %v455_v43 = vmax.f32 %v424_v37, 0.0  ;;  %v481_v44 = vsel %vm480_vm2, %v467_v38, 0.0  ;;  %v502_v45 = vsel %vm480_vm2, %v474_v39, 0.0 }
  0xf0   : > { %v428_v46 = vpop.f32.mrf.mxu1  ;;  %482 = vadd.xlane.f32.xlu0 %v481_v44  ;;  %v393_v47 = vpop.f32.mrf.mxu0  ;;  %503 = vadd.xlane.f32.xlu1 %v502_v45  ;;  %v521_v41 = vstv %s520_s14 }
  0xf1   : > { %v429_v48 = vadd.f32 %v1313_v24, %v428_v46  ;;  %v394_v49 = vadd.f32 %v1313_v24, %v393_v47  ;;  %v468_v50 = vmul.f32 %v1320_v31, %v448_v42  ;;  %v475_v51 = vmul.f32 %v1320_v31, %v455_v43 }
  0xf2   : > { %v899_v52 = vpop.f32.mrf.mxu0  ;;  %v920_v53 = vpop.f32.mrf.mxu1 }
  0xf3   : > { %v456_v54 = vmax.f32 %v429_v48, 0.0  ;;  %v449_v55 = vmax.f32 %v394_v49, 0.0  ;;  %v484_v56 = vsel %vm480_vm2, %v468_v50, 0.0  ;;  %v505_v59 = vsel %vm480_vm2, %v475_v51, 0.0 }
  0xf4   : > { %v433_v57 = vpop.f32.mrf.mxu1  ;;  %485 = vadd.xlane.f32.xlu0 %v484_v56  ;;  %v398_v58 = vpop.f32.mrf.mxu0 }
  0xf5   : > { %v434_v60 = vadd.f32 %v1313_v24, %v433_v57  ;;  %v399_v61 = vadd.f32 %v1313_v24, %v398_v58  ;;  %v469_v62 = vmul.f32 %v1320_v31, %v449_v55  ;;  %v476_v63 = vmul.f32 %v1320_v31, %v456_v54 }
  0xf6   : > { %v902_v0 = vpop.f32.mrf.mxu0  ;;  %v923_v1 = vpop.f32.mrf.mxu1 }
  0xf7   : > { %v457_v2 = vmax.f32 %v434_v60, 0.0  ;;  %v450_v3 = vmax.f32 %v399_v61, 0.0  ;;  %v487_v4 = vsel %vm480_vm2, %v469_v62, 0.0  ;;  %v508_v9 = vsel %vm480_vm2, %v476_v63, 0.0 }
  0xf8   : > { %506 = vadd.xlane.f32.xlu0 %v505_v59  ;;  %488 = vadd.xlane.f32.xlu1 %v487_v4  ;;  %v403_v5 = vpop.f32.mrf.mxu0  ;;  %v438_v6 = vpop.f32.mrf.mxu1 }
  0xf9   : > { %v404_v7 = vadd.f32 %v1313_v24, %v403_v5  ;;  %v477_v8 = vmul.f32 %v1320_v31, %v457_v2  ;;  %v439_v10 = vadd.f32 %v1313_v24, %v438_v6  ;;  %v470_v15 = vmul.f32 %v1320_v31, %v450_v3 }
  0xfa   : > { %v905_v11 = vpop.f32.mrf.mxu0  ;;  %v926_v12 = vpop.f32.mrf.mxu1 }
  0xfb   : > { %v451_v13 = vmax.f32 %v404_v7, 0.0  ;;  %v511_v14 = vsel %vm480_vm2, %v477_v8, 0.0  ;;  %v458_v19 = vmax.f32 %v439_v10, 0.0  ;;  %v490_v26 = vsel %vm480_vm2, %v470_v15, 0.0 }
  0xfc   : > { %512 = vadd.xlane.f32.xlu0 %v511_v14  ;;  %509 = vadd.xlane.f32.xlu1 %v508_v9  ;;  %v408_v16 = vpop.f32.mrf.mxu0  ;;  %v443_v17 = vpop.f32.mrf.mxu1 }
  0xfd   : > { %v409_v18 = vadd.f32 %v1313_v24, %v408_v16  ;;  %v471_v20 = vmul.f32 %v1320_v31, %v451_v13  ;;  %v444_v21 = vadd.f32 %v1313_v24, %v443_v17  ;;  %v478_v33 = vmul.f32 %v1320_v31, %v458_v19 }
  0xfe   : > { %v908_v22 = vpop.f32.mrf.mxu0  ;;  %v929_v23 = vpop.f32.mrf.mxu1 }
  0xff   : > { %v452_v25 = vmax.f32 %v409_v18, 0.0  ;;  %v493_v27 = vsel %vm480_vm2, %v471_v20, 0.0  ;;  %v459_v30 = vmax.f32 %v444_v21, 0.0  ;;  %v514_v37 = vsel %vm480_vm2, %v478_v33, 0.0 }
 0x100   : > { %491 = vadd.xlane.f32.xlu1 %v490_v26  ;;  %494 = vadd.xlane.f32.xlu0 %v493_v27  ;;  %v413_v28 = vpop.f32.mrf.mxu0 }
 0x101   : > { %v414_v29 = vadd.f32 %v1313_v24, %v413_v28  ;;  %v472_v32 = vmul.f32 %v1320_v31, %v452_v25  ;;  %v479_v39 = vmul.f32 %v1320_v31, %v459_v30 }
 0x102   : > { %v911_v34 = vpop.f32.mrf.mxu0 }
 0x103   : > { %v453_v35 = vmax.f32 %v414_v29, 0.0  ;;  %v496_v36 = vsel %vm480_vm2, %v472_v32, 0.0  ;;  %v517_v24 = vsel %vm480_vm2, %v479_v39, 0.0 }
 0x104   : > { %497 = vadd.xlane.f32.xlu1 %v496_v36 }
 0x105   : > { %v473_v38 = vmul.f32 %v1320_v31, %v453_v35 }
 0x107   : > { %v499_v40 = vsel %vm480_vm2, %v473_v38, 0.0 }
 0x108   : > { %515 = vadd.xlane.f32.xlu1 %v514_v37  ;;  %500 = vadd.xlane.f32.xlu0 %v499_v40 }
 0x10c   : > { %518 = vadd.xlane.f32.xlu0 %v517_v24 }
 0x179   : > { %v483_v42 = vpop.xlane.xlu0 %482  ;;  %v504_v43 = vpop.xlane.xlu1 %503 }
 0x17a   : > { %v522_v44 = vadd.f32 %v521_v41, %v483_v42  ;;  %v529_v45 = vadd.f32 %v521_v41, %v504_v43 }
 0x17c   : > { %536 = vst.msk [vmem:[%s1360_s17] sm:$0xff] %vm535_vm3, %v522_v44  ;;  %543 = vst.msk [vmem:[%s1360_s17 + $0x38] sm:$0xff] %vm535_vm3, %v529_v45 }
 0x17d   : > { %v486_v31 = vpop.xlane.xlu0 %485 }
 0x17e   : > { %v523_v46 = vadd.f32 %v521_v41, %v486_v31 }
 0x180   : > { %537 = vst.msk [vmem:[%s1360_s17 + $0x8] sm:$0xff] %vm535_vm3, %v523_v46 }
 0x181   : > { %v507_v47 = vpop.xlane.xlu0 %506  ;;  %v489_v48 = vpop.xlane.xlu1 %488 }
 0x182   : > { %v530_v49 = vadd.f32 %v521_v41, %v507_v47  ;;  %v524_v50 = vadd.f32 %v521_v41, %v489_v48 }
 0x184   : > { %544 = vst.msk [vmem:[%s1360_s17 + $0x40] sm:$0xff] %vm535_vm3, %v530_v49  ;;  %538 = vst.msk [vmem:[%s1360_s17 + $0x10] sm:$0xff] %vm535_vm3, %v524_v50 }
 0x185   : > { %v513_v51 = vpop.xlane.xlu0 %512  ;;  %v510_v52 = vpop.xlane.xlu1 %509 }
 0x186   : > { %v532_v53 = vadd.f32 %v521_v41, %v513_v51  ;;  %v531_v54 = vadd.f32 %v521_v41, %v510_v52 }
 0x188   : > { %546 = vst.msk [vmem:[%s1360_s17 + $0x50] sm:$0xff] %vm535_vm3, %v532_v53  ;;  %545 = vst.msk [vmem:[%s1360_s17 + $0x48] sm:$0xff] %vm535_vm3, %v531_v54 }
 0x189   : > { %v492_v55 = vpop.xlane.xlu1 %491  ;;  %v495_v56 = vpop.xlane.xlu0 %494 }
 0x18a   : > { %v525_v57 = vadd.f32 %v521_v41, %v492_v55  ;;  %v526_v58 = vadd.f32 %v521_v41, %v495_v56 }
 0x18c   : > { %539 = vst.msk [vmem:[%s1360_s17 + $0x18] sm:$0xff] %vm535_vm3, %v525_v57  ;;  %540 = vst.msk [vmem:[%s1360_s17 + $0x20] sm:$0xff] %vm535_vm3, %v526_v58 }
 0x18d   : > { %v498_v59 = vpop.xlane.xlu1 %497 }
 0x18e   : > { %v527_v60 = vadd.f32 %v521_v41, %v498_v59 }
 0x190   : > { %541 = vst.msk [vmem:[%s1360_s17 + $0x28] sm:$0xff] %vm535_vm3, %v527_v60 }
 0x191   : > { %v516_v61 = vpop.xlane.xlu1 %515  ;;  %v501_v62 = vpop.xlane.xlu0 %500 }
 0x192   : > { %v533_v63 = vadd.f32 %v521_v41, %v516_v61  ;;  %v528_v0 = vadd.f32 %v521_v41, %v501_v62 }
 0x194   : > { %547 = vst.msk [vmem:[%s1360_s17 + $0x58] sm:$0xff] %vm535_vm3, %v533_v63  ;;  %542 = vst.msk [vmem:[%s1360_s17 + $0x30] sm:$0xff] %vm535_vm3, %v528_v0  ;;  %555 = sbr.rel (!%p1194_p4) target bundleno = 462 (0x1ce), region = 44 }
 0x195   : > { %v519_v1 = vpop.xlane.xlu0 %518 }
 0x196   : > { %v534_v2 = vadd.f32 %v521_v41, %v519_v1 }
 0x198   : > { %548 = vst.msk [vmem:[%s1360_s17 + $0x60] sm:$0xff] %vm535_vm3, %v534_v2 }
 0x199   : > { %s1491_s20 = smov (!%p558_p8, %s557_s20), 13 }
 0x19a   : > { %s835_s25 = sshll.u32 %s1491_s20, 7 }
 0x19b   : > { %p838_p9 = scmp.eq.s32.totalorder %s835_s25, 0 }
 0x19c   : > { %1042 = sdivrem.u32 (!%p838_p9), %s1491_s20, 13 }
 0x19d   : > { %566 = sbr.rel (%p838_p9) target bundleno = 462 (0x1ce), region = 48 }
 0x1a5   : > { %s1401_s27 = spop.drf %1042 }
 0x1a6   : > { %p839_p10 = scmp.le.s32.totalorder %s1401_s27, 0 }
 0x1a7   : > { %s1484_s4 = smov (!%p839_p10), %s1395_s24  ;;  %s1485_s7 = smov (!%p839_p10), %s1360_s17 }
 0x1a8   : > { %771 = sbr.rel (%p839_p10) target bundleno = 437 (0x1b5), region = 124  ;;  %s1410_s28 = smov (!%p839_p10), 0  }
 0x1a9   : > { %s1412_s29 = smov (!%p839_p10), 0  }
 0x1ad LB: >> { %v655_v3 = vld [vmem:[%s1108_s7] sm:$0xff]  ;;  %v657_v4 = vld [vmem:[%s1108_s7 + $0x8] sm:$0xff]  ;;  %v659_v5 = vld [vmem:[%s1108_s7 + $0x10] sm:$0xff]  ;;  %s681_s30 = sadd.s32 1, %s1112_s28  ;;  %s649_s29 = sadd.s32 1, %s1116_s29   ;;  %s1116_s29 = sphi %s1412_s29, %s649_s29   ;;  %s1112_s28 = sphi %s1410_s28, %s1486_s28   ;;  %s1108_s7 = sphi %s1485_s7, %s686_s7   ;;  %s1104_s4 = sphi %s1484_s4, %s687_s4  }
 0x1ae   : >> { %656 = vst [vmem:[%s1104_s4] sm:$0xff] %v655_v3  ;;  %658 = vst [vmem:[%s1104_s4 + $0x8] sm:$0xff] %v657_v4  ;;  %v661_v6 = vld [vmem:[%s1108_s7 + $0x18] sm:$0xff]  ;;  %v663_v7 = vld [vmem:[%s1108_s7 + $0x20] sm:$0xff]  ;;  %p682_p11 = scmp.ge.s32.totalorder %s681_s30, %s1401_s27  ;;  %p648_p12 = scmp.ge.s32.totalorder %s649_s29, %s1401_s27 }
 0x1af   : >> { %660 = vst [vmem:[%s1104_s4 + $0x10] sm:$0xff] %v659_v5  ;;  %v665_v8 = vld [vmem:[%s1108_s7 + $0x28] sm:$0xff]  ;;  %662 = vst [vmem:[%s1104_s4 + $0x18] sm:$0xff] %v661_v6  ;;  %v667_v9 = vld [vmem:[%s1108_s7 + $0x30] sm:$0xff] }
 0x1b0   : >> { %664 = vst [vmem:[%s1104_s4 + $0x20] sm:$0xff] %v663_v7  ;;  %666 = vst [vmem:[%s1104_s4 + $0x28] sm:$0xff] %v665_v8  ;;  %v669_v10 = vld [vmem:[%s1108_s7 + $0x38] sm:$0xff]  ;;  %v671_v11 = vld [vmem:[%s1108_s7 + $0x40] sm:$0xff]  ;;  %s1493_s30 = smov (%p682_p11, %s681_s30), 0  ;;  %651 = sbr.rel (!%p648_p12) target bundleno = 429 (0x1ad), region = 130 }
 0x1b1   : >> { %668 = vst [vmem:[%s1104_s4 + $0x30] sm:$0xff] %v667_v9  ;;  %670 = vst [vmem:[%s1104_s4 + $0x38] sm:$0xff] %v669_v10  ;;  %v673_v12 = vld [vmem:[%s1108_s7 + $0x48] sm:$0xff]  ;;  %v675_v13 = vld [vmem:[%s1108_s7 + $0x50] sm:$0xff]  ;;  %s684_s6 = smul.u32 104, %s1493_s30  ;;  %s1486_s28 = smov %s1493_s30 }
 0x1b2   : >> { %672 = vst [vmem:[%s1104_s4 + $0x40] sm:$0xff] %v671_v11  ;;  %v677_v14 = vld [vmem:[%s1108_s7 + $0x58] sm:$0xff]  ;;  %674 = vst [vmem:[%s1104_s4 + $0x48] sm:$0xff] %v673_v12  ;;  %v679_v15 = vld [vmem:[%s1108_s7 + $0x60] sm:$0xff] }
 0x1b3   : >> { %676 = vst [vmem:[%s1104_s4 + $0x50] sm:$0xff] %v675_v13  ;;  %678 = vst [vmem:[%s1104_s4 + $0x58] sm:$0xff] %v677_v14  ;;  %s686_s7 = scalar_lea.vmem %s1360_s17, %s684_s6 [#allocation3]  }
 0x1b4   : >> { %680 = vst [vmem:[%s1104_s4 + $0x60] sm:$0xff] %v679_v15  ;;  %s687_s4 = scalar_lea.vmem %s1395_s24, %s684_s6  }
 0x1b5 PF: > { %1044 = sdivrem.u32 %s1491_s20, 13 }
 0x1b6   : > { %s840_s8 = smul.u32 104, %s1401_s27 }
 0x1b8   : > { %s692_s9 = scalar_lea.vmem %s1360_s17, %s840_s8 [#allocation3]   ;;  %s694_s10 = scalar_lea.vmem %s1395_s24, %s840_s8  }
 0x1be   : > { %s1045_s11 = spop.drf %1044 }
 0x1bf   : > { %p842_p13 = scmp.le.s32.totalorder %s1045_s11, 0 }
 0x1c0   : > { %s1118_s12 = smov (!%p842_p13), %s694_s10   ;;  %s1122_s13 = smov (!%p842_p13), %s692_s9  }
 0x1c1   : > { %785 = sbr.rel (%p842_p13) target bundleno = 462 (0x1ce), region = 135  ;;  %s1126_s14 = smov (!%p842_p13), 0  }
 0x1c2   : > { %s1130_s15 = smov (!%p842_p13), 0  }
 0x1c6 LB: >> { %v704_v16 = vld [vmem:[%s1124_s13] sm:$0xff]  ;;  %s706_s16 = sadd.s32 1, %s1128_s14  ;;  %s698_s15 = sadd.s32 1, %s1132_s15   ;;  %s1132_s15 = sphi %s1130_s15, %s698_s15   ;;  %s1128_s14 = sphi %s1126_s14, %s1127_s14   ;;  %s1124_s13 = sphi %s1122_s13, %s711_s13   ;;  %s1120_s12 = sphi %s1118_s12, %s712_s12  }
 0x1c7   : >> { %705 = vst [vmem:[%s1120_s12] sm:$0xff] %v704_v16  ;;  %p707_p0 = scmp.ge.s32.totalorder %s706_s16, %s1045_s11  ;;  %p697_p1 = scmp.ge.s32.totalorder %s698_s15, %s1045_s11 }
 0x1c9   : >> { %s1495_s16 = smov (%p707_p0, %s706_s16), 0  ;;  %700 = sbr.rel (!%p697_p1) target bundleno = 454 (0x1c6), region = 141 }
 0x1ca   : >> { %s843_s17 = sshll.u32 %s1495_s16, 3  ;;  %s1127_s14 = smov %s1495_s16  }
 0x1cb   : >> { %s711_s13 = scalar_lea.vmem %s692_s9, %s843_s17 [#allocation3]   ;;  %s712_s12 = scalar_lea.vmem %s694_s10, %s843_s17  }
 0x1ce PF: > { %p13_p2 = scmp.ge.s32.totalorder %s1184_s23, 4   ;;  %s1487_s20 = smov %s1096_s21 }
 0x1cf   : > { %s1488_s21 = smov %s1192_s26  ;;  %s1489_s22 = smov %s1184_s23 }
 0x1d0   :  { %15 = sbr.rel (!%p13_p2) target bundleno = 4 (0x4), region = 152 }

</bundles_post_ra>
